<compile_context>
chip_gen: v5e
topology: v5e:2x2
jax: 0.10.0
libtpu: 0.0.40
codegen_flags: <defaults>
</compile_context>

<pallas_src>
import functools

import jax
import jax.numpy as jnp
from jax.experimental import pallas as pl
from jax.experimental.pallas import tpu as pltpu


def _accuracy_kernel(labels_ref, logits_ref, out_ref, *, ignore_index):
    x = logits_ref[...]                            # (TN, V) native dtype
    labels = labels_ref[...]                       # (TN, 1) int32
    vocab = x.shape[-1]

    # First-occurrence argmax along the last (lane) axis, kept 2-D for layout.
    max_val = jnp.max(x, axis=-1, keepdims=True)                       # (TN, 1)
    col_ids = jax.lax.broadcasted_iota(jnp.int32, x.shape, 1)          # (TN, V)
    preds = jnp.min(jnp.where(x == max_val, col_ids, vocab),
                    axis=-1, keepdims=True)                            # (TN, 1)

    valid = labels != ignore_index                                     # (TN, 1)
    correct = jnp.logical_and(preds == labels, valid)

    # Per-block partial counts; reduced across blocks in the wrapper.
    out_ref[0, 0] = jnp.sum(correct.astype(jnp.int32))
    out_ref[0, 1] = jnp.sum(valid.astype(jnp.int32))


def _choose_tile_rows(n_rows, vocab, itemsize,
                      target_block_bytes=4 * 1024 * 1024,
                      max_rows=2048):
    """Largest multiple-of-32 row tile whose logits block stays <= ~4 MiB.

    4 MiB/block * 2 pipeline buffers = 8 MiB of logits VMEM, which fits the
    default scoped-VMEM budget on v5e/v6e and v7x's smaller 64 MiB VMEM.
    Multiple-of-32 rows keeps sublane packing dense for f32/bf16/int8.
    """
    rows = target_block_bytes // max(vocab * itemsize, 1)
    rows = (rows // 32) * 32
    rows = max(rows, 32)
    rows = min(rows, max_rows)
    # Never larger than needed to cover the whole input (rounded up to 32).
    rows = min(rows, max(32, pl.cdiv(n_rows, 32) * 32))
    return int(rows)


def accuracy_pallas(logits, labels, ignore_index: int = -100, tile_rows=None):
    """logits: (..., V) float; labels: (...) int. Returns scalar float32."""
    vocab = logits.shape[-1]
    logits2 = logits.reshape(-1, vocab)
    labels2 = labels.reshape(-1, 1).astype(jnp.int32)
    n = logits2.shape[0]
    itemsize = jnp.dtype(logits2.dtype).itemsize

    if tile_rows is None:
        tile_rows = _choose_tile_rows(n, vocab, itemsize)
    # TODO(synk): for very large vocabularies (V*itemsize >> 4 MiB) add a
    # second grid axis over V with a running (max, first-argmax) VMEM scratch.

    num_blocks = pl.cdiv(n, tile_rows)
    n_pad = num_blocks * tile_rows

    # Pad ONLY the labels (tiny) so out-of-range rows are ignore_index; the
    # logits are left unpadded and the edge block's out-of-bounds rows are
    # neutralized because their labels are ignore_index (valid=False).
    if n_pad != n:
        labels2 = jnp.pad(labels2, ((0, n_pad - n), (0, 0)),
                          constant_values=ignore_index)

    cost = pl.CostEstimate(
        flops=2 * n * vocab,
        transcendentals=0,
        bytes_accessed=n * vocab * itemsize + n * 4,
    )

    counts = pl.pallas_call(
        functools.partial(_accuracy_kernel, ignore_index=ignore_index),
        out_shape=jax.ShapeDtypeStruct((num_blocks, 2), jnp.int32),
        grid_spec=pltpu.PrefetchScalarGridSpec(
            num_scalar_prefetch=0,
            grid=(num_blocks,),
            in_specs=[
                pl.BlockSpec((tile_rows, 1), lambda i: (i, 0)),       # labels
                pl.BlockSpec((tile_rows, vocab), lambda i: (i, 0)),   # logits
            ],
            out_specs=pl.BlockSpec((1, 2), lambda i: (i, 0),
                                   memory_space=pltpu.SMEM),
        ),
        compiler_params=pltpu.CompilerParams(
            dimension_semantics=("parallel",),
            vmem_limit_bytes=32 * 1024 * 1024,
        ),
        cost_estimate=cost,
    )(labels2, logits2)

    totals = jnp.sum(counts, axis=0)
    return totals[0].astype(jnp.float32) / totals[1].astype(jnp.float32)


def accuracy_ref(logits, labels, ignore_index: int = -100):
    valid = labels != ignore_index
    preds = jnp.argmax(logits.astype(jnp.float32), axis=-1)
    correct = (preds == labels) & valid
    return correct.sum().astype(jnp.float32) / valid.sum().astype(jnp.float32)


if __name__ == "__main__":
    key = jax.random.PRNGKey(0)
    k1, k2, k3, k4 = jax.random.split(key, 4)

    ignore_index = -100

    # Case 1: f32 logits, shapes typical of the module (batch, seq, vocab).
    B, S, V = 2, 8, 32
    logits = jax.random.normal(k1, (B, S, V), dtype=jnp.float32)
    labels = jax.random.randint(k2, (B, S), 0, V, dtype=jnp.int32)
    labels = labels.at[0, 0].set(ignore_index)
    labels = labels.at[1, 3].set(ignore_index)
    labels = labels.at[1, 7].set(ignore_index)

    out1 = jax.block_until_ready(
        accuracy_pallas(logits, labels, ignore_index=ignore_index))
    ref1 = accuracy_ref(logits, labels, ignore_index=ignore_index)
    assert jnp.allclose(out1, ref1, atol=1e-6), (out1, ref1)

    # Case 2: bf16 logits, row count not divisible by the tile
    # (exercises the unpadded-logits edge block + native-dtype compare).
    B2, S2, V2 = 3, 7, 48
    logits_bf = jax.random.normal(
        k3, (B2, S2, V2), dtype=jnp.float32).astype(jnp.bfloat16)
    labels_bf = jax.random.randint(k4, (B2, S2), 0, V2, dtype=jnp.int32)
    labels_bf = labels_bf.at[0, 1].set(ignore_index)
    labels_bf = labels_bf.at[2, 5].set(ignore_index)

    out2 = jax.block_until_ready(
        accuracy_pallas(logits_bf, labels_bf, ignore_index=ignore_index))
    ref2 = accuracy_ref(logits_bf, labels_bf, ignore_index=ignore_index)
    assert jnp.allclose(out2, ref2, atol=1e-6), (out2, ref2)

    print("KERNEL_OK")
</pallas_src>

<mosaic_0001>
module attributes {stable_mosaic.version = 11 : i64} {
  func.func @_accuracy_kernel(%arg0: i32, %arg1: memref<32x1xi32, #tpu.memory_space<vmem>>, %arg2: memref<32x32xf32, #tpu.memory_space<vmem>>, %arg3: memref<1x2xi32, #tpu.memory_space<smem>>) attributes {dimension_semantics = [#tpu.dimension_semantics<parallel>], iteration_bounds = array<i64: 1>, scalar_prefetch = 0 : i64, scratch_operands = 0 : i64, tpu.core_type = #tpu.core_type<tc>, window_params = [{transform_indices = @transform_0, window_bounds = array<i64: 32, 1>}, {transform_indices = @transform_1, window_bounds = array<i64: 32, 32>}, {transform_indices = @transform_2, window_bounds = array<i64: 1, 2>}]} {
    %c0 = arith.constant 0 : index
    %c0_0 = arith.constant 0 : index
    %0 = vector.load %arg2[%c0, %c0_0] : memref<32x32xf32, #tpu.memory_space<vmem>>, vector<32x32xf32>
    %c0_1 = arith.constant 0 : index
    %c0_2 = arith.constant 0 : index
    %1 = vector.load %arg1[%c0_1, %c0_2] : memref<32x1xi32, #tpu.memory_space<vmem>>, vector<32x1xi32>
    %cst = arith.constant dense<0xFF800000> : vector<32xf32>
    %2 = vector.multi_reduction <maximumf>, %0, %cst [1] : vector<32x32xf32> to vector<32xf32>
    %3 = vector.shape_cast %2 : vector<32xf32> to vector<32x1xf32>
    %4 = tpu.iota {dimensions = array<i32: 1>} : vector<32x32xi32>
    %5 = vector.broadcast %3 : vector<32x1xf32> to vector<32x32xf32>
    %6 = arith.cmpf oeq, %0, %5 : vector<32x32xf32>
    %c32_i32 = arith.constant 32 : i32
    %7 = vector.broadcast %c32_i32 : i32 to vector<32x32xi32>
    %8 = arith.select %6, %4, %7 : vector<32x32xi1>, vector<32x32xi32>
    %cst_3 = arith.constant dense<2147483647> : vector<32xi32>
    %9 = vector.multi_reduction <minsi>, %8, %cst_3 [1] : vector<32x32xi32> to vector<32xi32>
    %10 = vector.shape_cast %9 : vector<32xi32> to vector<32x1xi32>
    %c-100_i32 = arith.constant -100 : i32
    %11 = vector.broadcast %c-100_i32 : i32 to vector<32x1xi32>
    %12 = arith.cmpi ne, %1, %11 : vector<32x1xi32>
    %13 = arith.cmpi eq, %10, %1 : vector<32x1xi32>
    %14 = arith.andi %13, %12 : vector<32x1xi1>
    %15 = arith.extui %14 : vector<32x1xi1> to vector<32x1xi32>
    %16 = vector.shape_cast %15 : vector<32x1xi32> to vector<1x32x1xi32>
    %cst_4 = arith.constant dense<0> : vector<1xi32>
    %17 = vector.multi_reduction <add>, %16, %cst_4 [1, 2] : vector<1x32x1xi32> to vector<1xi32>
    %18 = vector.shape_cast %17 : vector<1xi32> to vector<1x1x1xi32>
    %19 = vector.extract %18[0, 0, 0] : i32 from vector<1x1x1xi32>
    %c0_5 = arith.constant 0 : index
    %c0_6 = arith.constant 0 : index
    %20 = memref.load %arg3[%c0_5, %c0_6] : memref<1x2xi32, #tpu.memory_space<smem>>
    memref.store %19, %arg3[%c0_5, %c0_6] : memref<1x2xi32, #tpu.memory_space<smem>>
    %21 = arith.extui %12 : vector<32x1xi1> to vector<32x1xi32>
    %22 = vector.shape_cast %21 : vector<32x1xi32> to vector<1x32x1xi32>
    %cst_7 = arith.constant dense<0> : vector<1xi32>
    %23 = vector.multi_reduction <add>, %22, %cst_7 [1, 2] : vector<1x32x1xi32> to vector<1xi32>
    %24 = vector.shape_cast %23 : vector<1xi32> to vector<1x1x1xi32>
    %25 = vector.extract %24[0, 0, 0] : i32 from vector<1x1x1xi32>
    %c0_8 = arith.constant 0 : index
    %c1 = arith.constant 1 : index
    %26 = memref.load %arg3[%c0_8, %c1] : memref<1x2xi32, #tpu.memory_space<smem>>
    memref.store %25, %arg3[%c0_8, %c1] : memref<1x2xi32, #tpu.memory_space<smem>>
    return
  }
  func.func @transform_0(%arg0: i32) -> (i32, i32) {
    %c0_i32 = arith.constant 0 : i32
    %c0_i32_0 = arith.constant 0 : i32
    return %arg0, %c0_i32 : i32, i32
  }
  func.func @transform_1(%arg0: i32) -> (i32, i32) {
    %c0_i32 = arith.constant 0 : i32
    %c0_i32_0 = arith.constant 0 : i32
    return %arg0, %c0_i32 : i32, i32
  }
  func.func @transform_2(%arg0: i32) -> (i32, i32) {
    %c0_i32 = arith.constant 0 : i32
    %c0_i32_0 = arith.constant 0 : i32
    return %arg0, %c0_i32 : i32, i32
  }
}

</mosaic_0001>

<bundles_post_ra>
// kernel: tpu_custom_call.1
= control target key start
LH: loop header
LB: loop body
LE: loop exit
PB: predicated region body
PF: predicated region fallthrough
CT: control target
= control target key end

     0   :  { %vm20_vm0 = vcmask 261120   ;;  %s283_s0 = inlined_call_operand.vmem [shape: s32[32,1], index: 0, kind: input, shape index: {}]   ;;  %s284_s1 = inlined_call_operand.vmem [shape: f32[16,32], index: 1, kind: input, shape index: {}]   ;;  %s285_s2 = inlined_call_operand.hbm [shape: s32[1,2], index: 2, kind: output, shape index: {}]  }
   0x1   :  { %v14_v0 = vld [vmem:[%s284_s1 + $0x10] sm:$0xff]  ;;  %v12_v1 = vld [vmem:[%s284_s1] sm:$0xff] }
   0x2   :  { %v27_v2 = vsel %vm20_vm0, %v14_v0, -inf  ;;  %v21_v3 = vsel %vm20_vm0, %v12_v1, -inf }
   0x3   :  { %7 = vsyncpa [#allocation3], 0  ;;  %28 = vmax.xlane.f32.xlu1 %v27_v2  ;;  %22 = vmax.xlane.f32.xlu0 %v21_v3  ;;  %v15_v4 = vld [vmem:[%s284_s1 + $0x18] sm:$0xff]  ;;  %v13_v5 = vld [vmem:[%s284_s1 + $0x8] sm:$0xff]  ;;  %v33_v8 = vlaneseq  ;;  %v215_v50 = vmov 0   ;;  %vm119_vm13 = vcmask 7168  }
   0x4   :  { %v30_v6 = vsel %vm20_vm0, %v15_v4, -inf  ;;  %v24_v7 = vsel %vm20_vm0, %v13_v5, -inf  ;;  %v16_v46 = vld [vmem:[%s283_s0] sm:$0xff]  ;;  %v18_v47 = vld [vmem:[%s283_s0 + $0x10] sm:$0xff]  ;;  %v19_v48 = vld [vmem:[%s283_s0 + $0x18] sm:$0xff]  ;;  %s185_s26 = sshll.u32 %s285_s2, 4  ;;  %s186_s26 = int_to_ptr.hbm [resolvable:$true] %s185_s26 }
   0x5   :  { %v34_v9 = vand.u32 127, %v33_v8  ;;  %v17_v49 = vld [vmem:[%s283_s0 + $0x8] sm:$0xff]  ;;  %vm103_vm9 = vcmp.ne.s32.totalorder %v16_v46, 4294967196  ;;  %vm105_vm10 = vcmp.ne.s32.totalorder %v18_v47, 4294967196  ;;  %vm106_vm11 = vcmp.ne.s32.totalorder %v19_v48, 4294967196  ;;  %s216_s28 = smov [#allocation2]  }
   0x6   :  { %vm104_vm12 = vcmp.ne.s32.totalorder %v17_v49, 4294967196  ;;  %v148_v51 = vsel %vm103_vm9, 1, %v215_v50  ;;  %v150_v52 = vsel %vm105_vm10, 1, %v215_v50  ;;  %v151_v53 = vsel %vm106_vm11, 1, %v215_v50 }
   0x7   :  { %v149_v54 = vsel %vm104_vm12, 1, %v215_v50  ;;  %v152_v55 = vsel %vm119_vm13, %v148_v51, 0  ;;  %v154_v57 = vsel %vm119_vm13, %v150_v52, 0  ;;  %v155_v58 = vsel %vm119_vm13, %v151_v53, 0 }
   0x8   :  { %v153_v56 = vsel %vm119_vm13, %v149_v54, 0  ;;  %v157_v60 = vadd.s32 %v155_v58, %v154_v57 }
   0x9   :  { %v156_v59 = vadd.s32 %v153_v56, %v152_v55 }
   0xb   :  { %31 = vmax.xlane.f32.xlu1 %v30_v6  ;;  %25 = vmax.xlane.f32.xlu0 %v24_v7  ;;  %v158_v61 = vadd.s32 %v157_v60, %v156_v59 }
   0xd   :  { %v160_v62 = vshrl.u32 %v158_v61, 16 }
  0x76   :  { %v29_v10 = vpop.xlane.xlu1 %28  ;;  %v23_v11 = vpop.xlane.xlu0 %22 }
  0x77   :  { %vm37_vm1 = vcmp.eq.f32.partialorder %v14_v0, %v29_v10  ;;  %vm35_vm2 = vcmp.eq.f32.partialorder %v12_v1, %v23_v11  ;;  %v162_v1 = vcvt.s32.f32 %v160_v62 }
  0x78   :  { %v41_v12 = vsel %vm37_vm1, %v34_v9, 32  ;;  %v39_v13 = vsel %vm35_vm2, %v34_v9, 32 }
  0x79   :  { %v73_v14 = vsel %vm20_vm0, %v41_v12, 2147483647  ;;  %v43_v15 = vsel %vm20_vm0, %v39_v13, 2147483647 }
  0x7a   :  { %v75_v16 = vshra.s32 %v73_v14, 16  ;;  %v45_v17 = vshra.s32 %v43_v15, 16  ;;  %v44_v30 = vand.u32 65535, %v43_v15  ;;  %v74_v31 = vand.u32 65535, %v73_v14 }
  0x7c   :  { %v77_v18 = vcvt.s32.f32 %v75_v16  ;;  %v47_v19 = vcvt.s32.f32 %v45_v17  ;;  %v46_v34 = vcvt.s32.f32 %v44_v30  ;;  %v76_v35 = vcvt.s32.f32 %v74_v31 }
  0x7e   :  { %v32_v20 = vpop.xlane.xlu1 %31  ;;  %78 = vmin.xlane.f32.xlu0 %v77_v18  ;;  %48 = vmin.xlane.f32.xlu2 %v47_v19  ;;  %v26_v21 = vpop.xlane.xlu0 %25 }
  0x7f   :  { %vm38_vm3 = vcmp.eq.f32.partialorder %v15_v4, %v32_v20  ;;  %vm36_vm4 = vcmp.eq.f32.partialorder %v13_v5, %v26_v21 }
  0x80   :  { %v42_v22 = vsel %vm38_vm3, %v34_v9, 32  ;;  %v40_v23 = vsel %vm36_vm4, %v34_v9, 32 }
  0x81   :  { %v88_v24 = vsel %vm20_vm0, %v42_v22, 2147483647  ;;  %v58_v25 = vsel %vm20_vm0, %v40_v23, 2147483647 }
  0x82   :  { %v90_v26 = vshra.s32 %v88_v24, 16  ;;  %v60_v27 = vshra.s32 %v58_v25, 16  ;;  %v89_v38 = vand.u32 65535, %v88_v24  ;;  %v59_v39 = vand.u32 65535, %v58_v25 }
  0x84   :  { %v92_v28 = vcvt.s32.f32 %v90_v26  ;;  %v62_v29 = vcvt.s32.f32 %v60_v27  ;;  %v91_v42 = vcvt.s32.f32 %v89_v38  ;;  %v61_v43 = vcvt.s32.f32 %v59_v39 }
  0x86   :  { %93 = vmin.xlane.f32.xlu1 %v92_v28  ;;  %63 = vmin.xlane.f32.xlu2 %v62_v29 }
  0xf1   :  { %v49_v32 = vpop.xlane.xlu2 %48  ;;  %v79_v33 = vpop.xlane.xlu0 %78 }
  0xf2   :  { %vm50_vm5 = vcmp.eq.f32.partialorder %v47_v19, %v49_v32  ;;  %vm80_vm6 = vcmp.eq.f32.partialorder %v77_v18, %v79_v33  ;;  %v85_v63 = vcvt.f32.s32 %v79_v33  ;;  %v55_v0 = vcvt.f32.s32 %v49_v32 }
  0xf3   :  { %v51_v36 = vsel %vm50_vm5, %v46_v34, inf  ;;  %v81_v37 = vsel %vm80_vm6, %v76_v35, inf  ;;  %v159_v35 = vand.u32 65535, %v158_v61 }
  0xf4   :  { %52 = vmin.xlane.f32.xlu2 %v51_v36  ;;  %82 = vmin.xlane.f32.xlu1 %v81_v37  ;;  %v86_v4 = vshll.u32 %v85_v63, 16  ;;  %v56_v7 = vshll.u32 %v55_v0, 16 }
  0xf5   :  { %v161_v36 = vcvt.s32.f32 %v159_v35 }
  0xf9   :  { %v94_v40 = vpop.xlane.xlu1 %93  ;;  %v64_v41 = vpop.xlane.xlu2 %63 }
  0xfa   :  { %vm95_vm7 = vcmp.eq.f32.partialorder %v92_v28, %v94_v40  ;;  %vm65_vm8 = vcmp.eq.f32.partialorder %v62_v29, %v64_v41  ;;  %v100_v10 = vcvt.f32.s32 %v94_v40  ;;  %v70_v11 = vcvt.f32.s32 %v64_v41 }
  0xfb   :  { %v96_v44 = vsel %vm95_vm7, %v91_v42, inf  ;;  %v66_v45 = vsel %vm65_vm8, %v61_v43, inf }
  0xfc   :  { %97 = vmin.xlane.f32.xlu2 %v96_v44  ;;  %67 = vmin.xlane.f32.xlu0 %v66_v45  ;;  %v101_v14 = vshll.u32 %v100_v10, 16  ;;  %v71_v15 = vshll.u32 %v70_v11, 16 }
  0xfd   :  { %165 = vadd.xlane.f32.xlu1 %v162_v1 }
 0x167   :  { %v53_v2 = vpop.xlane.xlu2 %52  ;;  %v83_v3 = vpop.xlane.xlu1 %82 }
 0x168   :  { %v54_v5 = vcvt.f32.s32 %v53_v2  ;;  %v84_v6 = vcvt.f32.s32 %v83_v3 }
 0x16a   :  { %v87_v8 = vadd.s32 %v86_v4, %v84_v6  ;;  %v57_v9 = vadd.s32 %v56_v7, %v54_v5 }
 0x16c   :  { %vm109_vm14 = vcmp.eq.s32.totalorder %v87_v8, %v18_v47  ;;  %vm107_vm15 = vcmp.eq.s32.totalorder %v57_v9, %v16_v46 }
 0x16d   :  { %vm113_vm0 = vmand %vm109_vm14, %vm105_vm10 }
 0x16e   :  { %vm111_vm1 = vmand %vm107_vm15, %vm103_vm9  ;;  %v117_v20 = vsel %vm113_vm0, 1, %v215_v50 }
 0x16f   :  { %v98_v12 = vpop.xlane.xlu2 %97  ;;  %v68_v13 = vpop.xlane.xlu0 %67  ;;  %v115_v21 = vsel %vm111_vm1, 1, %v215_v50  ;;  %v122_v24 = vsel %vm119_vm13, %v117_v20, 0 }
 0x170   :  { %v99_v16 = vcvt.f32.s32 %v98_v12  ;;  %v69_v17 = vcvt.f32.s32 %v68_v13  ;;  %v120_v26 = vsel %vm119_vm13, %v115_v21, 0  ;;  %v166_v37 = vpop.xlane.xlu1 %165 }
 0x171   :  { %v168_v43 = vcvt.f32.s32 %v166_v37 }
 0x172   :  { %v102_v18 = vadd.s32 %v101_v14, %v99_v16  ;;  %v72_v19 = vadd.s32 %v71_v15, %v69_v17 }
 0x173   :  { %v169_v46 = vshll.u32 %v168_v43, 16 }
 0x174   :  { %vm110_vm2 = vcmp.eq.s32.totalorder %v102_v18, %v19_v48  ;;  %vm108_vm3 = vcmp.eq.s32.totalorder %v72_v19, %v17_v49 }
 0x175   :  { %vm114_vm4 = vmand %vm110_vm2, %vm106_vm11 }
 0x176   :  { %v118_v22 = vsel %vm114_vm4, 1, %v215_v50  ;;  %vm112_vm5 = vmand %vm108_vm3, %vm104_vm12 }
 0x177   :  { %v116_v23 = vsel %vm112_vm5, 1, %v215_v50  ;;  %v123_v25 = vsel %vm119_vm13, %v118_v22, 0 }
 0x178   :  { %v121_v27 = vsel %vm119_vm13, %v116_v23, 0  ;;  %v125_v28 = vadd.s32 %v123_v25, %v122_v24 }
 0x179   :  { %v124_v29 = vadd.s32 %v121_v27, %v120_v26 }
 0x17b   :  { %v126_v30 = vadd.s32 %v125_v28, %v124_v29 }
 0x17d   :  { %v128_v31 = vshrl.u32 %v126_v30, 16  ;;  %v127_v32 = vand.u32 65535, %v126_v30 }
 0x17f   :  { %v130_v33 = vcvt.s32.f32 %v128_v31  ;;  %v129_v34 = vcvt.s32.f32 %v127_v32 }
 0x181   :  { %133 = vadd.xlane.f32.xlu0 %v130_v33  ;;  %131 = vadd.xlane.f32.xlu2 %v129_v34 }
 0x189   :  { %163 = vadd.xlane.f32.xlu0 %v161_v36 }
 0x1f4   :  { %v134_v38 = vpop.xlane.xlu0 %133  ;;  %v132_v39 = vpop.xlane.xlu2 %131 }
 0x1f5   :  { %v136_v40 = vcvt.f32.s32 %v134_v38  ;;  %v135_v42 = vcvt.f32.s32 %v132_v39 }
 0x1f7   :  { %v137_v41 = vshll.u32 %v136_v40, 16 }
 0x1f9   :  { %v138_v44 = vadd.s32 %v137_v41, %v135_v42 }
 0x1fb   :  { %v139_v45 = vrot.slane %v138_v44, 4 }
 0x1fc   :  { %v164_v47 = vpop.xlane.xlu0 %163 }
 0x1fd   :  { %v140_v48 = vadd.s32 %v139_v45, %v138_v44  ;;  %v167_v49 = vcvt.f32.s32 %v164_v47 }
 0x1ff   :  { %v170_v50 = vadd.s32 %v169_v46, %v167_v49  ;;  %v141_v51 = vrot.slane %v140_v48, 2 }
 0x201   :  { %v171_v52 = vrot.slane %v170_v50, 4  ;;  %v142_v53 = vadd.s32 %v141_v51, %v140_v48 }
 0x203   :  { %v172_v54 = vadd.s32 %v171_v52, %v170_v50  ;;  %v143_v55 = vrot.slane %v142_v53, 1 }
 0x205   :  { %v144_v56 = vadd.s32 %v143_v55, %v142_v53  ;;  %v173_v57 = vrot.slane %v172_v54, 2 }
 0x207   :  { %195 = vpush %v144_v56  ;;  %v174_v58 = vadd.s32 %v173_v57, %v172_v54 }
 0x209   :  { %v175_v59 = vrot.slane %v174_v58, 1 }
 0x20b   :  { %v176_v60 = vadd.s32 %v175_v59, %v174_v58 }
 0x20d   :  { %197 = vpush %v176_v60 }
 0x238   :  { %s196_s0 = spop %195 }
 0x239   :  { %147 = sst [smem:[#allocation2]] %s196_s0 }
 0x23e   :  { %s198_s27 = spop %197 }
 0x23f   :  { %179 = sst [smem:[#allocation2 + $0x1]] %s198_s27 }
 0x240   :  { %188 = dma.smem_to_hbm %s216_s28, 16, %s186_s26, [#allocation3]  }
 0x241   :  { %213 = dma.done.wait [#allocation3], 16  }
 0x242   :  { %214 = vsyncadd [#allocation3], 4294967280 }
 0x243   :  { %193 = sfence }
 0x244   :  { %194 = vsyncpa [#allocation3], 1 }

</bundles_post_ra>
